<compile_context>
chip_gen: v6e
topology: v6e:2x2x1
jax: 0.10.0
libtpu: 0.0.40
codegen_flags: <defaults>
</compile_context>

<pallas_src>
import math

import jax
import jax.numpy as jnp
from jax.experimental import pallas as pl
from jax.experimental.pallas import tpu as pltpu


def _round_up(v, mult):
    return (v + mult - 1) // mult * mult


def _linear_kernel(x_ref, w_ref, b_ref, o_ref):
    # In-kernel operand cast: no-op when W is f32; bf16 MXU passes when W is bf16.
    x = x_ref[...].astype(w_ref.dtype)
    acc = jnp.dot(x, w_ref[...], preferred_element_type=jnp.float32)
    # Epilogue stays strictly f32 (bias is f32); only the dot operands may be bf16.
    o_ref[...] = (acc + b_ref[...]).astype(o_ref.dtype)


def _linear_call(x2d, w_kn, b_row, tm_eff, grid_m, out_dtype, vmem_limit,
                 single_buffer_weights):
    m, in_feats = x2d.shape
    n_pad = w_kn.shape[1]
    if single_buffer_weights:
        # W / bias never change block index across the grid -> one pipeline buffer.
        w_spec = pl.BlockSpec((in_feats, n_pad), lambda i: (0, 0),
                              pipeline_mode=pl.Buffered(1))
        b_spec = pl.BlockSpec((1, n_pad), lambda i: (0, 0),
                              pipeline_mode=pl.Buffered(1))
    else:
        w_spec = pl.BlockSpec((in_feats, n_pad), lambda i: (0, 0))
        b_spec = pl.BlockSpec((1, n_pad), lambda i: (0, 0))

    return pl.pallas_call(
        _linear_kernel,
        out_shape=jax.ShapeDtypeStruct((m, n_pad), out_dtype),
        grid_spec=pl.GridSpec(
            grid=(grid_m,),
            in_specs=[
                pl.BlockSpec((tm_eff, in_feats), lambda i: (i, 0)),  # x tile (pipelined)
                w_spec,                                              # W resident
                b_spec,                                              # bias resident
            ],
            out_specs=pl.BlockSpec((tm_eff, n_pad), lambda i: (i, 0)),
        ),
        compiler_params=pltpu.CompilerParams(
            dimension_semantics=("parallel",),   # M tiles independent (v7x megacore)
            vmem_limit_bytes=vmem_limit,         # tight, computed budget
        ),
    )(x2d, w_kn, b_row)


def pose_embedding(x, w_kn, b_row, latent_dim, *, tm=2048, out_dtype=None):
    """y = x @ W + b over the last dim of x.

    x:     (..., input_feats)                  f32 (or bf16)
    w_kn:  (input_feats, n_pad)  pre-transposed at init; N zero-padded to a
                                 multiple of 128 only when needed; may be bf16.
    b_row: (1, n_pad)            f32, zero-padded.
    """
    in_feats = x.shape[-1]
    n_pad = w_kn.shape[1]
    lead_shape = x.shape[:-1]
    m = math.prod(lead_shape) if lead_shape else 1
    if out_dtype is None:
        out_dtype = x.dtype

    # Contiguous (seq, batch, feats) layout -> this reshape is a no-op view.
    x2d = x.reshape(m, in_feats)

    # Tile M. tm stays a multiple of 8 (sublane constraint) and is capped so that
    # grid_m >= 2 (keeps both v7x TensorCores fed). Partial last tile is handled by
    # Pallas (masked edge block) -- no jnp.pad / post-slice on M.
    half_m = _round_up(pl.cdiv(m, 2), 8)
    tm_eff = max(8, min(tm, half_m))
    grid_m = pl.cdiv(m, tm_eff)

    # Scoped-VMEM budget: double-buffered x/out tiles + single-buffered W/bias,
    # plus headroom for Mosaic internal scratch. Never request the whole 64 MiB.
    x_b = jnp.dtype(x2d.dtype).itemsize
    w_b = jnp.dtype(w_kn.dtype).itemsize
    o_b = jnp.dtype(out_dtype).itemsize
    footprint = (2 * tm_eff * (in_feats * x_b + n_pad * o_b)
                 + in_feats * n_pad * w_b + n_pad * 4)
    vmem_limit = int(min(48 << 20, max(4 << 20, footprint * 3 // 2 + (2 << 20))))

    try:
        out = _linear_call(x2d, w_kn, b_row, tm_eff, grid_m, out_dtype,
                           vmem_limit, single_buffer_weights=True)
    except Exception:
        # Fallback if this JAX build rejects pipeline_mode=pl.Buffered(1).
        out = _linear_call(x2d, w_kn, b_row, tm_eff, grid_m, out_dtype,
                           vmem_limit, single_buffer_weights=False)

    if n_pad != latent_dim:
        out = out[:, :latent_dim]   # only fires when latent_dim % 128 != 0
    return out.reshape(*lead_shape, latent_dim)


class InputProcessPallas:
    """JAX/Pallas port of InputProcess. Only the 'rot6d'/'xyz'/'hml_vec' branch
    has a forward path in the reference."""

    def __init__(self, data_rep, input_feats, latent_dim, key,
                 use_bf16_operands=False, output_dtype=None,
                 tm=2048, min_pallas_rows=1024):
        self.data_rep = data_rep
        self.input_feats = input_feats
        self.latent_dim = latent_dim
        self.output_dtype = output_dtype     # e.g. jnp.bfloat16 halves HBM writeback
        self.tm = tm
        self.min_pallas_rows = min_pallas_rows

        k1, k2, k3, k4 = jax.random.split(key, 4)
        # Deterministic init mimicking nn.Linear default (uniform +/- 1/sqrt(fan_in)).
        bound = 1.0 / math.sqrt(input_feats)
        self.pose_w = jax.random.uniform(
            k1, (latent_dim, input_feats), jnp.float32, -bound, bound)
        self.pose_b = jax.random.uniform(
            k2, (latent_dim,), jnp.float32, -bound, bound)

        # Pre-transpose W to (K, N) once at init; pad N to a multiple of 128 only
        # when latent_dim isn't already lane-aligned (lane-dense output stores).
        n_pad = latent_dim if latent_dim % 128 == 0 else _round_up(latent_dim, 128)
        self.n_pad = n_pad
        w_kn = jnp.zeros((input_feats, n_pad), jnp.float32)
        w_kn = w_kn.at[:, :latent_dim].set(self.pose_w.T)
        if use_bf16_operands:
            # Cached bf16 W; x is cast to bf16 INSIDE the kernel (no wrapper astype,
            # no extra HBM traffic). Changes numerics vs f32 nn.Linear; off by default.
            w_kn = w_kn.astype(jnp.bfloat16)
        self.w_kn = w_kn
        b_row = jnp.zeros((1, n_pad), jnp.float32)
        self.b_row = b_row.at[:, :latent_dim].set(self.pose_b)

        if self.data_rep == 'rot_vel':
            # TODO(synk): 'rot_vel' has no forward path in the reference (forward
            # returns None for it); params allocated for parity only.
            self.vel_w = jax.random.uniform(
                k3, (latent_dim, input_feats), jnp.float32, -bound, bound)
            self.vel_b = jax.random.uniform(
                k4, (latent_dim,), jnp.float32, -bound, bound)

    def __call__(self, x):
        if self.data_rep in ['rot6d', 'xyz', 'hml_vec']:
            m = math.prod(x.shape[:-1]) if x.ndim > 1 else 1
            if m < self.min_pallas_rows:
                # Small-M fast path: fixed pallas_call/Mosaic launch cost dominates;
                # XLA's fused dot is faster for a handful of rows.
                y = x @ self.pose_w.T + self.pose_b
                return y.astype(self.output_dtype) if self.output_dtype else y
            return pose_embedding(x, self.w_kn, self.b_row, self.latent_dim,
                                  tm=self.tm, out_dtype=self.output_dtype)
        # Reference forward() falls through (returns None) for other data_reps.
        return None


if __name__ == "__main__":
    key = jax.random.PRNGKey(0)
    k1, k2, k3, kx1, kx2, kx3 = jax.random.split(key, 6)

    # 1) Pallas path, unaligned latent_dim (N padded to 128, partial last M tile,
    #    multi-tile grid). min_pallas_rows=0 forces the kernel even at small M.
    m1 = InputProcessPallas('hml_vec', 35, 96, k1, min_pallas_rows=0)
    x1 = jax.random.normal(kx1, (40, 3, 35), jnp.float32)
    y1 = jax.block_until_ready(m1(x1))
    ref1 = x1 @ m1.pose_w.T + m1.pose_b
    assert y1.shape == (40, 3, 96)
    assert jnp.allclose(y1, ref1, atol=1e-4, rtol=1e-4)

    # 2) Pallas path, lane-aligned latent_dim (no N pad, no post-slice).
    m2 = InputProcessPallas('rot6d', 32, 128, k2, min_pallas_rows=0)
    x2 = jax.random.normal(kx2, (16, 4, 32), jnp.float32)
    y2 = jax.block_until_ready(m2(x2))
    ref2 = x2 @ m2.pose_w.T + m2.pose_b
    assert y2.shape == (16, 4, 128)
    assert jnp.allclose(y2, ref2, atol=1e-4, rtol=1e-4)

    # 3) Default module on a tiny input exercises the small-M fast path.
    m3 = InputProcessPallas('xyz', 32, 64, k3)
    x3 = jax.random.normal(kx3, (8, 2, 32), jnp.float32)
    y3 = jax.block_until_ready(m3(x3))
    ref3 = x3 @ m3.pose_w.T + m3.pose_b
    assert y3.shape == (8, 2, 64)
    assert jnp.allclose(y3, ref3, atol=1e-4, rtol=1e-4)

    print("KERNEL_OK")
</pallas_src>

<mosaic_0001>
module attributes {stable_mosaic.version = 11 : i64} {
  func.func @_linear_kernel(%arg0: i32, %arg1: memref<64x35xf32, #tpu.memory_space<vmem>>, %arg2: memref<35x128xf32, #tpu.memory_space<vmem>>, %arg3: memref<1x128xf32, #tpu.memory_space<vmem>>, %arg4: memref<64x128xf32, #tpu.memory_space<vmem>>) attributes {dimension_semantics = [#tpu.dimension_semantics<parallel>], iteration_bounds = array<i64: 2>, scalar_prefetch = 0 : i64, scratch_operands = 0 : i64, tpu.core_type = #tpu.core_type<tc>, window_params = [{transform_indices = @transform_0, window_bounds = array<i64: 64, 35>}, {pipeline_mode = #tpu.pipeline_mode<synchronous>, transform_indices = @transform_1, window_bounds = array<i64: 35, 128>}, {pipeline_mode = #tpu.pipeline_mode<synchronous>, transform_indices = @transform_2, window_bounds = array<i64: 1, 128>}, {transform_indices = @transform_3, window_bounds = array<i64: 64, 128>}]} {
    %c0 = arith.constant 0 : index
    %c0_0 = arith.constant 0 : index
    %0 = vector.load %arg1[%c0, %c0_0] : memref<64x35xf32, #tpu.memory_space<vmem>>, vector<64x35xf32>
    %c0_1 = arith.constant 0 : index
    %c0_2 = arith.constant 0 : index
    %1 = vector.load %arg2[%c0_1, %c0_2] : memref<35x128xf32, #tpu.memory_space<vmem>>, vector<35x128xf32>
    %cst = arith.constant dense<0.000000e+00> : vector<64x128xf32>
    %2 = tpu.matmul %0, %1, %cst {dimension_numbers = #tpu.dot_dimension_numbers<[1], [0], [0], [1], [0, 0, 1, 1], [], []>} : vector<64x35xf32>, vector<35x128xf32>, vector<64x128xf32> -> vector<64x128xf32>
    %c0_3 = arith.constant 0 : index
    %c0_4 = arith.constant 0 : index
    %3 = vector.load %arg3[%c0_3, %c0_4] : memref<1x128xf32, #tpu.memory_space<vmem>>, vector<1x128xf32>
    %4 = vector.broadcast %3 : vector<1x128xf32> to vector<64x128xf32>
    %5 = arith.addf %2, %4 : vector<64x128xf32>
    %c0_5 = arith.constant 0 : index
    %c0_6 = arith.constant 0 : index
    %6 = vector.load %arg4[%c0_5, %c0_6] : memref<64x128xf32, #tpu.memory_space<vmem>>, vector<64x128xf32>
    tpu.vector_store %arg4[%c0_5, %c0_6], %5 {strides = array<i32>} : memref<64x128xf32, #tpu.memory_space<vmem>>, vector<64x128xf32>,
    return
  }
  func.func @transform_0(%arg0: i32) -> (i32, i32) {
    %c0_i32 = arith.constant 0 : i32
    %c0_i32_0 = arith.constant 0 : i32
    return %arg0, %c0_i32 : i32, i32
  }
  func.func @transform_1(%arg0: i32) -> (i32, i32) {
    %c0_i32 = arith.constant 0 : i32
    %c0_i32_0 = arith.constant 0 : i32
    %c0_i32_1 = arith.constant 0 : i32
    return %c0_i32, %c0_i32_0 : i32, i32
  }
  func.func @transform_2(%arg0: i32) -> (i32, i32) {
    %c0_i32 = arith.constant 0 : i32
    %c0_i32_0 = arith.constant 0 : i32
    %c0_i32_1 = arith.constant 0 : i32
    return %c0_i32, %c0_i32_0 : i32, i32
  }
  func.func @transform_3(%arg0: i32) -> (i32, i32) {
    %c0_i32 = arith.constant 0 : i32
    %c0_i32_0 = arith.constant 0 : i32
    return %arg0, %c0_i32 : i32, i32
  }
}

module attributes {stable_mosaic.version = 11 : i64} {
  func.func @_linear_kernel(%arg0: i32, %arg1: memref<64x35xf32, #tpu.memory_space<vmem>>, %arg2: memref<35x128xf32, #tpu.memory_space<vmem>>, %arg3: memref<1x128xf32, #tpu.memory_space<vmem>>, %arg4: memref<64x128xf32, #tpu.memory_space<vmem>>) attributes {dimension_semantics = [#tpu.dimension_semantics<parallel>], iteration_bounds = array<i64: 2>, scalar_prefetch = 0 : i64, scratch_operands = 0 : i64, tpu.core_type = #tpu.core_type<tc>, window_params = [{transform_indices = @transform_0, window_bounds = array<i64: 64, 35>}, {pipeline_mode = #tpu.pipeline_mode<synchronous>, transform_indices = @transform_1, window_bounds = array<i64: 35, 128>}, {pipeline_mode = #tpu.pipeline_mode<synchronous>, transform_indices = @transform_2, window_bounds = array<i64: 1, 128>}, {transform_indices = @transform_3, window_bounds = array<i64: 64, 128>}]} {
    %c0 = arith.constant 0 : index
    %c0_0 = arith.constant 0 : index
    %0 = vector.load %arg1[%c0, %c0_0] : memref<64x35xf32, #tpu.memory_space<vmem>>, vector<64x35xf32>
    %c0_1 = arith.constant 0 : index
    %c0_2 = arith.constant 0 : index
    %1 = vector.load %arg2[%c0_1, %c0_2] : memref<35x128xf32, #tpu.memory_space<vmem>>, vector<35x128xf32>
    %cst = arith.constant dense<0.000000e+00> : vector<64x128xf32>
    %2 = tpu.matmul %0, %1, %cst {dimension_numbers = #tpu.dot_dimension_numbers<[1], [0], [0], [1], [0, 0, 1, 1], [], []>} : vector<64x35xf32>, vector<35x128xf32>, vector<64x128xf32> -> vector<64x128xf32>
    %c0_3 = arith.constant 0 : index
    %c0_4 = arith.constant 0 : index
    %3 = vector.load %arg3[%c0_3, %c0_4] : memref<1x128xf32, #tpu.memory_space<vmem>>, vector<1x128xf32>
    %4 = vector.broadcast %3 : vector<1x128xf32> to vector<64x128xf32>
    %5 = arith.addf %2, %4 : vector<64x128xf32>
    %c0_5 = arith.constant 0 : index
    %c0_6 = arith.constant 0 : index
    %6 = vector.load %arg4[%c0_5, %c0_6] : memref<64x128xf32, #tpu.memory_space<vmem>>, vector<64x128xf32>
    tpu.vector_store %arg4[%c0_5, %c0_6], %5 {strides = array<i32>} : memref<64x128xf32, #tpu.memory_space<vmem>>, vector<64x128xf32>,
    return
  }
  func.func @transform_0(%arg0: i32) -> (i32, i32) {
    %c0_i32 = arith.constant 0 : i32
    %c0_i32_0 = arith.constant 0 : i32
    return %arg0, %c0_i32 : i32, i32
  }
  func.func @transform_1(%arg0: i32) -> (i32, i32) {
    %c0_i32 = arith.constant 0 : i32
    %c0_i32_0 = arith.constant 0 : i32
    %c0_i32_1 = arith.constant 0 : i32
    return %c0_i32, %c0_i32_0 : i32, i32
  }
  func.func @transform_2(%arg0: i32) -> (i32, i32) {
    %c0_i32 = arith.constant 0 : i32
    %c0_i32_0 = arith.constant 0 : i32
    %c0_i32_1 = arith.constant 0 : i32
    return %c0_i32, %c0_i32_0 : i32, i32
  }
  func.func @transform_3(%arg0: i32) -> (i32, i32) {
    %c0_i32 = arith.constant 0 : i32
    %c0_i32_0 = arith.constant 0 : i32
    return %arg0, %c0_i32 : i32, i32
  }
}

</mosaic_0001>

<bundles_post_ra>
// kernel: tpu_custom_call.1
= control target key start
LH: loop header
LB: loop body
LE: loop exit
PB: predicated region body
PF: predicated region fallthrough
CT: control target
= control target key end

     0   :  { %8 = vsyncpa [#allocation3], 0  ;;  %s790_s0 = inlined_call_operand.vmem [shape: f32[120,35], index: 0, kind: input, shape index: {}]   ;;  %s791_s1 = inlined_call_operand.vmem [shape: f32[35,128], index: 1, kind: input, shape index: {}]   ;;  %s792_s2 = inlined_call_operand.vmem [shape: f32[1,128], index: 2, kind: input, shape index: {}]   ;;  %s793_s3 = inlined_call_operand.hbm [shape: f32[120,128], index: 3, kind: output, shape index: {}]  }
   0x1   :  { %10 = vsyncpa [#allocation3 + $0x1], 0  ;;  %s637_s12 = smov 0   ;;  %s639_s13 = smov 0  }
   0x2   :  { %s641_s14 = smov 0   ;;  %s643_s15 = smov 0  }
   0x3 LB: > { %s658_s16 = sadd.s32 4294967295, %s612_s15   ;;  %s440_s17 = sadd.s32 4294967294, %s612_s15   ;;  %s612_s15 = sphi %s643_s15, %s799_s15   ;;  %s608_s14 = sphi %s641_s14, %s798_s14   ;;  %s604_s13 = sphi %s639_s13, %s797_s13   ;;  %s600_s12 = sphi %s637_s12, %s796_s12  }
   0x4   : > { %s662_s18 = sadd.s32 1, %s612_s15   ;;  %s91_s19 = sadd.s32 1, %s608_s14 }
   0x5   : > { %s88_s20 = ssub.s32 %s612_s15, %s662_s18  ;;  %p101_p0 = scmp.ne.s32.totalorder %s608_s14, %s604_s13 }
   0x6   : > { %p89_p1 = scmp.eq.s32.totalorder %s88_s20, 0  ;;  %p102_p2 = scmp.eq.s32.totalorder %s658_s16, 1 }
   0x7   : > { %p107_p3 = scmp.ne.s32.totalorder %s604_s13, %s600_s12  ;;  %p108_p4 = scmp.eq.s32.totalorder %s440_s17, 1 }
   0x8   : > { %s673_s21 = scalar_select %p89_p1, %s608_s14, %s91_s19  }
   0x9   : > { %p675_p5 = por %p102_p2, %p101_p0  ;;  %p679_p6 = por %p108_p4, %p107_p3 }
   0xa   : > { %p443_p7 = scmp.ge.s32.totalorder %s612_s15, 1  ;;  %p149_p8 = scmp.lt.s32.totalorder %s612_s15, 3 }
   0xc   : > { %p150_p9 = pnand %p443_p7, %p149_p8 }
   0xd   : > { %s692_s28 = sshll.u32 (!%p150_p9), %s658_s16, 3  ;;  %s174_s19 = sand.u32 (!%p150_p9), 1, %s604_s13  }
   0xe   : > { %153 = sbr.rel (%p150_p9) target bundleno = 260 (0x104), region = 32  ;;  %p182_p10 = scmp.lt.s32.totalorder (!%p150_p9), %s692_s28, 14 }
   0xf   : > { %s444_s20 = sshll.u32 (!%p150_p9), %s174_s19, 6  ;;  %s730_s27 = scalar_lea.sflag (!%p150_p9), [#allocation3], %s174_s19 }
  0x10   : > { %s720_s26 = scalar_lea.vmem (!%p150_p9), [#allocation2], %s444_s20 }
  0x13   : > { %v208_v0 = vld [vmem:[%s791_s1 + $0x20] sm:$0x7]  ;;  %vm241_vm0 = vcmask 1042432   ;;  %v207_v1 = vld [vmem:[%s791_s1 + $0x18] sm:$0xff]  ;;  %v206_v2 = vld [vmem:[%s791_s1 + $0x10] sm:$0xff]  ;;  %s183_s4 = scalar_select %p182_p10, %s692_s28, 14 }
  0x14   : > { %480 = vmatprep.subr.msk.mxu0 %vm241_vm0, %v208_v0  ;;  %502 = vmatprep.subr.msk.mxu1 %vm241_vm0, %v208_v0  ;;  %v205_v3 = vld [vmem:[%s791_s1 + $0x8] sm:$0xff]  ;;  %v204_v4 = vld [vmem:[%s791_s1] sm:$0xff]  ;;  %vm216_vm1 = vcmask 285696   ;;  %s367_s29 = ssub.s32 (%p675_p5), 15, %s692_s28 }
  0x15   : > { %481 = vmatpush3.msk.msra.mxu0 %vm241_vm0, %v208_v0  ;;  %507 = vmatpush3.msk.msra.mxu1 %vm241_vm0, %v208_v0  ;;  %s446_s7 = sshll.u32 %s183_s4, 3  ;;  %v447_v13 = vld [vmem:[%s792_s2] ss:$0 sm:$0xff]  ;;  %p368_p11 = scmp.lt.s32.totalorder (%p675_p5), %s367_s29, 8 }
  0x16   : > { %482 = vmatprep.subr.mxu0 %v207_v1  ;;  %503 = vmatprep.subr.mxu1 %v207_v1  ;;  %s185_s17 = scalar_lea.vmem %s790_s0, %s446_s7 }
  0x17   : > { %483 = vmatpush3.msra.mxu0 %v207_v1  ;;  %508 = vmatpush3.msra.mxu1 %v207_v1  ;;  %v196_v5 = vld [vmem:[%s185_s17] sm:$0xff]  ;;  %v197_v7 = vld [vmem:[%s185_s17 + $0x8] sm:$0xff]  ;;  %v198_v9 = vld [vmem:[%s185_s17 + $0x10] sm:$0xff] }
  0x18   : > { %484 = vmatprep.subr.mxu0 %v206_v2  ;;  %504 = vmatprep.subr.mxu1 %v206_v2  ;;  %v200_v6 = vld [vmem:[%s185_s17 + $0x20] sm:$0xff]  ;;  %v201_v8 = vld [vmem:[%s185_s17 + $0x28] sm:$0xff]  ;;  %v202_v10 = vld [vmem:[%s185_s17 + $0x30] sm:$0xff] }
  0x19   : > { %485 = vmatpush3.msra.mxu0 %v206_v2  ;;  %509 = vmatpush3.msra.mxu1 %v206_v2  ;;  %v199_v11 = vld [vmem:[%s185_s17 + $0x18] sm:$0xff] }
  0x1a   : > { %486 = vmatprep.subr.mxu0 %v205_v3  ;;  %505 = vmatprep.subr.mxu1 %v205_v3  ;;  %v203_v12 = vld [vmem:[%s185_s17 + $0x38] sm:$0xff] }
  0x1b   : > { %487 = vmatpush3.msra.mxu0 %v205_v3  ;;  %510 = vmatpush3.msra.mxu1 %v205_v3 }
  0x1c   : > { %488 = vmatprep.subr.mxu0 %v204_v4  ;;  %506 = vmatprep.subr.mxu1 %v204_v4 }
  0x1d   : > { %489 = vmatpush3.msra.mxu0 %v204_v4  ;;  %511 = vmatpush3.msra.mxu1 %v204_v4 }
  0x1e   : > { %490 = vmatprep.mubr.msk.f32.mxu0 %vm216_vm1, %v196_v5  ;;  %496 = vmatprep.mubr.msk.f32.mxu1 %vm216_vm1, %v200_v6 }
  0x1f   : > { %491 = vmatmul.mubr.msk.f32.vlgmr.msra.gmra.mxu0 %vm216_vm1, %v197_v7  ;;  %497 = vmatmul.mubr.msk.f32.vlgmr.msra.gmra.mxu1 %vm216_vm1, %v201_v8 }
  0x20   : > { %493 = vmatprep.mubr.msk.f32.mxu0 %vm216_vm1, %v198_v9  ;;  %499 = vmatprep.mubr.msk.f32.mxu1 %vm216_vm1, %v202_v10 }
  0x23   : > { %494 = vmatmul.mubr.msk.f32.gmra.mxu0 %vm216_vm1, %v199_v11  ;;  %500 = vmatmul.mubr.msk.f32.gmra.mxu1 %vm216_vm1, %v203_v12 }
  0xdf   : > { %v492_v14 = vpop.f32.mrf.mxu0  ;;  %v498_v15 = vpop.f32.mrf.mxu1 }
  0xe0   : > { %v317_v16 = vadd.f32 %v492_v14, %v447_v13  ;;  %v337_v17 = vadd.f32 %v498_v15, %v447_v13 }
  0xe1   : > { %v311_v18 = vpop.f32.mrf.mxu0  ;;  %v331_v19 = vpop.f32.mrf.mxu1 }
  0xe2   : > { %351 = vst [vmem:[%s720_s26 + $0x8] sm:$0xff] %v317_v16  ;;  %355 = vst [vmem:[%s720_s26 + $0x28] sm:$0xff] %v337_v17  ;;  %v312_v20 = vadd.f32 %v447_v13, %v311_v18  ;;  %v332_v21 = vadd.f32 %v447_v13, %v331_v19 }
  0xe3   : > { %v495_v22 = vpop.f32.mrf.mxu0  ;;  %v501_v23 = vpop.f32.mrf.mxu1 }
  0xe4   : > { %350 = vst [vmem:[%s720_s26] sm:$0xff] %v312_v20  ;;  %354 = vst [vmem:[%s720_s26 + $0x20] sm:$0xff] %v332_v21  ;;  %v327_v24 = vadd.f32 %v495_v22, %v447_v13  ;;  %v347_v25 = vadd.f32 %v501_v23, %v447_v13  ;;  %365 = sbr.rel (!%p675_p5) target bundleno = 260 (0x104), region = 36 }
  0xe5   : > { %v321_v26 = vpop.f32.mrf.mxu0  ;;  %v341_v27 = vpop.f32.mrf.mxu1 }
  0xe6   : > { %353 = vst [vmem:[%s720_s26 + $0x18] sm:$0xff] %v327_v24  ;;  %357 = vst [vmem:[%s720_s26 + $0x38] sm:$0xff] %v347_v25  ;;  %v322_v28 = vadd.f32 %v447_v13, %v321_v26  ;;  %v342_v29 = vadd.f32 %v447_v13, %v341_v27 }
  0xe8   : > { %352 = vst [vmem:[%s720_s26 + $0x10] sm:$0xff] %v322_v28  ;;  %356 = vst [vmem:[%s720_s26 + $0x30] sm:$0xff] %v342_v29 }
  0xe9   : > { %s801_s29 = smov (!%p368_p11, %s367_s29), 8 }
  0xea   : > { %s735_s30 = sshll.u32 %s801_s29, 7 }
  0xeb   : > { %s372_s4 = ssub.s32 1024, %s735_s30 }
  0xec   : > { %373 = vsyncadd %s730_s27, %s372_s4  ;;  %p460_p12 = scmp.ne.s32.totalorder %s735_s30, 0  ;;  %s466_s5 = sshll.u32 %s658_s16, 10 }
  0xed   : > { %s744_s7 = scalar_lea.hbm %s793_s3, %s466_s5  ;;  %s378_s28 = sshll.u32 %s720_s26, 4  ;;  %s747_s28 = int_to_ptr.vmem [resolvable:$true] %s378_s28 }
  0xee   : > { %s552_s8 = scalar_lea.vmem %s747_s28, %s735_s30  ;;  %s614_s9 = smov [#allocation2]  }
  0xef   : > { %p553_p13 = scmp.ne.s32.totalorder %s747_s28, %s552_s8  ;;  %s556_s10 = sshll.u32 %s614_s9, 4  ;;  %s557_s10 = int_to_ptr.vmem [resolvable:$false] %s556_s10 }
  0xf0   : > { %s558_s16 = scalar_lea.vmem %s557_s10, 2048  ;;  %p559_p2 = scmp.lt.s32.totalorder %s747_s28, %s557_s10 }
  0xf1   : > { %p554_p0 = pnand %p553_p13, %p460_p12  ;;  %p560_p3 = scmp.lt.s32.totalorder %s558_s16, %s552_s8 }
  0xf3   : > { %p555_p1 = pneg %p554_p0  ;;  %p561_p4 = por %p560_p3, %p559_p2 }
  0xf5   : > { %p562_p5 = pnand %p561_p4, %p555_p1 }
  0xf7   : > { %565 = shalt.err (!%p562_p5)
}
  0xf8   : > { %s566_s11 = scalar_lea.hbm %s744_s7, %s735_s30  ;;  %s570_s20 = scalar_lea.hbm %s793_s3, 1920 }
  0xf9   : > { %p567_p7 = scmp.ne.s32.totalorder %s744_s7, %s566_s11  ;;  %p571_p10 = scmp.lt.s32.totalorder %s744_s7, %s793_s3 }
  0xfa   : > { %p572_p11 = scmp.lt.s32.totalorder %s570_s20, %s566_s11 }
  0xfb   : > { %p568_p8 = pnand %p567_p7, %p460_p12 }
  0xfc   : > { %p573_p13 = por %p572_p11, %p571_p10 }
  0xfd   : > { %p569_p9 = pneg %p568_p8 }
  0xff   : > { %p574_p0 = pnand %p573_p13, %p569_p9 }
 0x101   : > { %577 = shalt.err (!%p574_p0)
}
 0x102   : > { %s615_s26 = smov 128   ;;  %s616_s29 = smov 8  }
 0x103   : > { %384 = dma.vmem_to_hbm [thread:$0]  (%p460_p12), %s747_s28, %s735_s30, %s744_s7, %s730_s27, %s615_s26, %s615_s26, %s616_s29  }
 0x104 PF: > { %p517_p1 = scmp.ge.s32.totalorder %s612_s15, 2  ;;  %s393_s4 = sand.u32 1, %s600_s12  }
 0x105   : > { %s394_s5 = scalar_lea.sflag [#allocation3], %s393_s4 }
 0x106   : > { %p514_p2 = pnand %p517_p1, %p679_p6 }
 0x108   : > { %p515_p3 = pneg %p514_p2 }
 0x10a   : > { %595 = dma.done.wait (%p515_p3), %s394_s5, 1024  }
 0x10b   : > { %597 = vsyncadd (%p515_p3), %s394_s5, 4294966272  ;;  %p13_p4 = scmp.ge.s32.totalorder %s662_s18, 4   ;;  %s796_s12 = smov %s604_s13 }
 0x10c   : > { %s797_s13 = smov %s608_s14  ;;  %s798_s14 = smov %s673_s21 }
 0x10d   : > { %s799_s15 = smov %s662_s18  ;;  %15 = sbr.rel (!%p13_p4) target bundleno = 3 (0x3), region = 67 }
 0x112   :  { %399 = vsyncpa [#allocation3], 1 }
 0x113   :  { %401 = vsyncpa [#allocation3 + $0x1], 1 }

// kernel: tpu_custom_call.1
= control target key start
LH: loop header
LB: loop body
LE: loop exit
PB: predicated region body
PF: predicated region fallthrough
CT: control target
= control target key end

     0   :  { %8 = vsyncpa [#allocation3], 0  ;;  %s790_s0 = inlined_call_operand.vmem [shape: f32[120,35], index: 0, kind: input, shape index: {}]   ;;  %s791_s1 = inlined_call_operand.vmem [shape: f32[35,128], index: 1, kind: input, shape index: {}]   ;;  %s792_s2 = inlined_call_operand.vmem [shape: f32[1,128], index: 2, kind: input, shape index: {}]   ;;  %s793_s3 = inlined_call_operand.hbm [shape: f32[120,128], index: 3, kind: output, shape index: {}]  }
   0x1   :  { %10 = vsyncpa [#allocation3 + $0x1], 0  ;;  %s637_s12 = smov 0   ;;  %s639_s13 = smov 0  }
   0x2   :  { %s641_s14 = smov 0   ;;  %s643_s15 = smov 0  }
   0x3 LB: > { %s658_s16 = sadd.s32 4294967295, %s612_s15   ;;  %s440_s17 = sadd.s32 4294967294, %s612_s15   ;;  %s612_s15 = sphi %s643_s15, %s799_s15   ;;  %s608_s14 = sphi %s641_s14, %s798_s14   ;;  %s604_s13 = sphi %s639_s13, %s797_s13   ;;  %s600_s12 = sphi %s637_s12, %s796_s12  }
   0x4   : > { %s662_s18 = sadd.s32 1, %s612_s15   ;;  %s91_s19 = sadd.s32 1, %s608_s14 }
   0x5   : > { %s88_s20 = ssub.s32 %s612_s15, %s662_s18  ;;  %p101_p0 = scmp.ne.s32.totalorder %s608_s14, %s604_s13 }
   0x6   : > { %p89_p1 = scmp.eq.s32.totalorder %s88_s20, 0  ;;  %p102_p2 = scmp.eq.s32.totalorder %s658_s16, 1 }
   0x7   : > { %p107_p3 = scmp.ne.s32.totalorder %s604_s13, %s600_s12  ;;  %p108_p4 = scmp.eq.s32.totalorder %s440_s17, 1 }
   0x8   : > { %s673_s21 = scalar_select %p89_p1, %s608_s14, %s91_s19  }
   0x9   : > { %p675_p5 = por %p102_p2, %p101_p0  ;;  %p679_p6 = por %p108_p4, %p107_p3 }
   0xa   : > { %p443_p7 = scmp.ge.s32.totalorder %s612_s15, 1  ;;  %p149_p8 = scmp.lt.s32.totalorder %s612_s15, 3 }
   0xc   : > { %p150_p9 = pnand %p443_p7, %p149_p8 }
   0xd   : > { %s692_s28 = sshll.u32 (!%p150_p9), %s658_s16, 3  ;;  %s174_s19 = sand.u32 (!%p150_p9), 1, %s604_s13  }
   0xe   : > { %153 = sbr.rel (%p150_p9) target bundleno = 260 (0x104), region = 32  ;;  %p182_p10 = scmp.lt.s32.totalorder (!%p150_p9), %s692_s28, 14 }
   0xf   : > { %s444_s20 = sshll.u32 (!%p150_p9), %s174_s19, 6  ;;  %s730_s27 = scalar_lea.sflag (!%p150_p9), [#allocation3], %s174_s19 }
  0x10   : > { %s720_s26 = scalar_lea.vmem (!%p150_p9), [#allocation2], %s444_s20 }
  0x13   : > { %v208_v0 = vld [vmem:[%s791_s1 + $0x20] sm:$0x7]  ;;  %vm241_vm0 = vcmask 1042432   ;;  %v207_v1 = vld [vmem:[%s791_s1 + $0x18] sm:$0xff]  ;;  %v206_v2 = vld [vmem:[%s791_s1 + $0x10] sm:$0xff]  ;;  %s183_s4 = scalar_select %p182_p10, %s692_s28, 14 }
  0x14   : > { %480 = vmatprep.subr.msk.mxu0 %vm241_vm0, %v208_v0  ;;  %502 = vmatprep.subr.msk.mxu1 %vm241_vm0, %v208_v0  ;;  %v205_v3 = vld [vmem:[%s791_s1 + $0x8] sm:$0xff]  ;;  %v204_v4 = vld [vmem:[%s791_s1] sm:$0xff]  ;;  %vm216_vm1 = vcmask 285696   ;;  %s367_s29 = ssub.s32 (%p675_p5), 15, %s692_s28 }
  0x15   : > { %481 = vmatpush3.msk.msra.mxu0 %vm241_vm0, %v208_v0  ;;  %507 = vmatpush3.msk.msra.mxu1 %vm241_vm0, %v208_v0  ;;  %s446_s7 = sshll.u32 %s183_s4, 3  ;;  %v447_v13 = vld [vmem:[%s792_s2] ss:$0 sm:$0xff]  ;;  %p368_p11 = scmp.lt.s32.totalorder (%p675_p5), %s367_s29, 8 }
  0x16   : > { %482 = vmatprep.subr.mxu0 %v207_v1  ;;  %503 = vmatprep.subr.mxu1 %v207_v1  ;;  %s185_s17 = scalar_lea.vmem %s790_s0, %s446_s7 }
  0x17   : > { %483 = vmatpush3.msra.mxu0 %v207_v1  ;;  %508 = vmatpush3.msra.mxu1 %v207_v1  ;;  %v196_v5 = vld [vmem:[%s185_s17] sm:$0xff]  ;;  %v197_v7 = vld [vmem:[%s185_s17 + $0x8] sm:$0xff]  ;;  %v198_v9 = vld [vmem:[%s185_s17 + $0x10] sm:$0xff] }
  0x18   : > { %484 = vmatprep.subr.mxu0 %v206_v2  ;;  %504 = vmatprep.subr.mxu1 %v206_v2  ;;  %v200_v6 = vld [vmem:[%s185_s17 + $0x20] sm:$0xff]  ;;  %v201_v8 = vld [vmem:[%s185_s17 + $0x28] sm:$0xff]  ;;  %v202_v10 = vld [vmem:[%s185_s17 + $0x30] sm:$0xff] }
  0x19   : > { %485 = vmatpush3.msra.mxu0 %v206_v2  ;;  %509 = vmatpush3.msra.mxu1 %v206_v2  ;;  %v199_v11 = vld [vmem:[%s185_s17 + $0x18] sm:$0xff] }
  0x1a   : > { %486 = vmatprep.subr.mxu0 %v205_v3  ;;  %505 = vmatprep.subr.mxu1 %v205_v3  ;;  %v203_v12 = vld [vmem:[%s185_s17 + $0x38] sm:$0xff] }
  0x1b   : > { %487 = vmatpush3.msra.mxu0 %v205_v3  ;;  %510 = vmatpush3.msra.mxu1 %v205_v3 }
  0x1c   : > { %488 = vmatprep.subr.mxu0 %v204_v4  ;;  %506 = vmatprep.subr.mxu1 %v204_v4 }
  0x1d   : > { %489 = vmatpush3.msra.mxu0 %v204_v4  ;;  %511 = vmatpush3.msra.mxu1 %v204_v4 }
  0x1e   : > { %490 = vmatprep.mubr.msk.f32.mxu0 %vm216_vm1, %v196_v5  ;;  %496 = vmatprep.mubr.msk.f32.mxu1 %vm216_vm1, %v200_v6 }
  0x1f   : > { %491 = vmatmul.mubr.msk.f32.vlgmr.msra.gmra.mxu0 %vm216_vm1, %v197_v7  ;;  %497 = vmatmul.mubr.msk.f32.vlgmr.msra.gmra.mxu1 %vm216_vm1, %v201_v8 }
  0x20   : > { %493 = vmatprep.mubr.msk.f32.mxu0 %vm216_vm1, %v198_v9  ;;  %499 = vmatprep.mubr.msk.f32.mxu1 %vm216_vm1, %v202_v10 }
  0x23   : > { %494 = vmatmul.mubr.msk.f32.gmra.mxu0 %vm216_vm1, %v199_v11  ;;  %500 = vmatmul.mubr.msk.f32.gmra.mxu1 %vm216_vm1, %v203_v12 }
  0xdf   : > { %v492_v14 = vpop.f32.mrf.mxu0  ;;  %v498_v15 = vpop.f32.mrf.mxu1 }
  0xe0   : > { %v317_v16 = vadd.f32 %v492_v14, %v447_v13  ;;  %v337_v17 = vadd.f32 %v498_v15, %v447_v13 }
  0xe1   : > { %v311_v18 = vpop.f32.mrf.mxu0  ;;  %v331_v19 = vpop.f32.mrf.mxu1 }
  0xe2   : > { %351 = vst [vmem:[%s720_s26 + $0x8] sm:$0xff] %v317_v16  ;;  %355 = vst [vmem:[%s720_s26 + $0x28] sm:$0xff] %v337_v17  ;;  %v312_v20 = vadd.f32 %v447_v13, %v311_v18  ;;  %v332_v21 = vadd.f32 %v447_v13, %v331_v19 }
  0xe3   : > { %v495_v22 = vpop.f32.mrf.mxu0  ;;  %v501_v23 = vpop.f32.mrf.mxu1 }
  0xe4   : > { %350 = vst [vmem:[%s720_s26] sm:$0xff] %v312_v20  ;;  %354 = vst [vmem:[%s720_s26 + $0x20] sm:$0xff] %v332_v21  ;;  %v327_v24 = vadd.f32 %v495_v22, %v447_v13  ;;  %v347_v25 = vadd.f32 %v501_v23, %v447_v13  ;;  %365 = sbr.rel (!%p675_p5) target bundleno = 260 (0x104), region = 36 }
  0xe5   : > { %v321_v26 = vpop.f32.mrf.mxu0  ;;  %v341_v27 = vpop.f32.mrf.mxu1 }
  0xe6   : > { %353 = vst [vmem:[%s720_s26 + $0x18] sm:$0xff] %v327_v24  ;;  %357 = vst [vmem:[%s720_s26 + $0x38] sm:$0xff] %v347_v25  ;;  %v322_v28 = vadd.f32 %v447_v13, %v321_v26  ;;  %v342_v29 = vadd.f32 %v447_v13, %v341_v27 }
  0xe8   : > { %352 = vst [vmem:[%s720_s26 + $0x10] sm:$0xff] %v322_v28  ;;  %356 = vst [vmem:[%s720_s26 + $0x30] sm:$0xff] %v342_v29 }
  0xe9   : > { %s801_s29 = smov (!%p368_p11, %s367_s29), 8 }
  0xea   : > { %s735_s30 = sshll.u32 %s801_s29, 7 }
  0xeb   : > { %s372_s4 = ssub.s32 1024, %s735_s30 }
  0xec   : > { %373 = vsyncadd %s730_s27, %s372_s4  ;;  %p460_p12 = scmp.ne.s32.totalorder %s735_s30, 0  ;;  %s466_s5 = sshll.u32 %s658_s16, 10 }
  0xed   : > { %s744_s7 = scalar_lea.hbm %s793_s3, %s466_s5  ;;  %s378_s28 = sshll.u32 %s720_s26, 4  ;;  %s747_s28 = int_to_ptr.vmem [resolvable:$true] %s378_s28 }
  0xee   : > { %s552_s8 = scalar_lea.vmem %s747_s28, %s735_s30  ;;  %s614_s9 = smov [#allocation2]  }
  0xef   : > { %p553_p13 = scmp.ne.s32.totalorder %s747_s28, %s552_s8  ;;  %s556_s10 = sshll.u32 %s614_s9, 4  ;;  %s557_s10 = int_to_ptr.vmem [resolvable:$false] %s556_s10 }
  0xf0   : > { %s558_s16 = scalar_lea.vmem %s557_s10, 2048  ;;  %p559_p2 = scmp.lt.s32.totalorder %s747_s28, %s557_s10 }
  0xf1   : > { %p554_p0 = pnand %p553_p13, %p460_p12  ;;  %p560_p3 = scmp.lt.s32.totalorder %s558_s16, %s552_s8 }
  0xf3   : > { %p555_p1 = pneg %p554_p0  ;;  %p561_p4 = por %p560_p3, %p559_p2 }
  0xf5   : > { %p562_p5 = pnand %p561_p4, %p555_p1 }
  0xf7   : > { %565 = shalt.err (!%p562_p5)
}
  0xf8   : > { %s566_s11 = scalar_lea.hbm %s744_s7, %s735_s30  ;;  %s570_s20 = scalar_lea.hbm %s793_s3, 1920 }
  0xf9   : > { %p567_p7 = scmp.ne.s32.totalorder %s744_s7, %s566_s11  ;;  %p571_p10 = scmp.lt.s32.totalorder %s744_s7, %s793_s3 }
  0xfa   : > { %p572_p11 = scmp.lt.s32.totalorder %s570_s20, %s566_s11 }
  0xfb   : > { %p568_p8 = pnand %p567_p7, %p460_p12 }
  0xfc   : > { %p573_p13 = por %p572_p11, %p571_p10 }
  0xfd   : > { %p569_p9 = pneg %p568_p8 }
  0xff   : > { %p574_p0 = pnand %p573_p13, %p569_p9 }
 0x101   : > { %577 = shalt.err (!%p574_p0)
}
 0x102   : > { %s615_s26 = smov 128   ;;  %s616_s29 = smov 8  }
 0x103   : > { %384 = dma.vmem_to_hbm [thread:$0]  (%p460_p12), %s747_s28, %s735_s30, %s744_s7, %s730_s27, %s615_s26, %s615_s26, %s616_s29  }
 0x104 PF: > { %p517_p1 = scmp.ge.s32.totalorder %s612_s15, 2  ;;  %s393_s4 = sand.u32 1, %s600_s12  }
 0x105   : > { %s394_s5 = scalar_lea.sflag [#allocation3], %s393_s4 }
 0x106   : > { %p514_p2 = pnand %p517_p1, %p679_p6 }
 0x108   : > { %p515_p3 = pneg %p514_p2 }
 0x10a   : > { %595 = dma.done.wait (%p515_p3), %s394_s5, 1024  }
 0x10b   : > { %597 = vsyncadd (%p515_p3), %s394_s5, 4294966272  ;;  %p13_p4 = scmp.ge.s32.totalorder %s662_s18, 4   ;;  %s796_s12 = smov %s604_s13 }
 0x10c   : > { %s797_s13 = smov %s608_s14  ;;  %s798_s14 = smov %s673_s21 }
 0x10d   : > { %s799_s15 = smov %s662_s18  ;;  %15 = sbr.rel (!%p13_p4) target bundleno = 3 (0x3), region = 67 }
 0x112   :  { %399 = vsyncpa [#allocation3], 1 }
 0x113   :  { %401 = vsyncpa [#allocation3 + $0x1], 1 }

</bundles_post_ra>
